<compile_context>
chip_gen: v6e
topology: v6e:2x2x1
jax: 0.10.0
libtpu: 0.0.40
codegen_flags: <defaults>
</compile_context>

<pallas_src>
import jax
import jax.numpy as jnp
from jax.experimental import pallas as pl
from jax.experimental.pallas import tpu as pltpu


def _linear_kernel(x_ref, w_ref, b_ref, o_ref):
    # Hot path: matmul with f32 accumulate + bias add, entirely in-kernel.
    acc = jnp.dot(x_ref[...], w_ref[...], preferred_element_type=jnp.float32)
    o_ref[...] = (acc + b_ref[...].astype(jnp.float32)).astype(o_ref.dtype)


def _forward_whole(x: jax.Array, w_t: jax.Array, b2d: jax.Array) -> jax.Array:
    """Grid-free path for small batches: one DMA per operand, no pipeline."""
    batch, _ = x.shape
    out_features = w_t.shape[1]
    vmem = pl.BlockSpec(memory_space=pltpu.MemorySpace.VMEM)
    return pl.pallas_call(
        _linear_kernel,
        out_shape=jax.ShapeDtypeStruct((batch, out_features), x.dtype),
        in_specs=[vmem, vmem, vmem],
        out_specs=vmem,
    )(x, w_t, b2d)


def _forward_tiled(x: jax.Array, w_t: jax.Array, b2d: jax.Array,
                   tile_b: int) -> jax.Array:
    """Batch-tiled path for large batches: only x streams from HBM; w/b stay
    VMEM-resident; batch axis is 'parallel' (sharded across TCs on v7x)."""
    batch, in_features = x.shape
    out_features = w_t.shape[1]
    return pl.pallas_call(
        _linear_kernel,
        out_shape=jax.ShapeDtypeStruct((batch, out_features), x.dtype),
        grid_spec=pl.GridSpec(
            grid=(pl.cdiv(batch, tile_b),),
            in_specs=[
                pl.BlockSpec((tile_b, in_features), lambda i: (i, 0)),
                pl.BlockSpec((in_features, out_features), lambda i: (0, 0)),
                pl.BlockSpec((1, out_features), lambda i: (0, 0)),
            ],
            out_specs=pl.BlockSpec((tile_b, out_features), lambda i: (i, 0)),
        ),
        compiler_params=pltpu.CompilerParams(
            dimension_semantics=("parallel",),
        ),
    )(x, w_t, b2d)


def dummy_model_forward(x: jax.Array, w_t: jax.Array, b2d: jax.Array,
                        *, tile_b: int = 512) -> jax.Array:
    """y = x @ w_t + b2d.  w_t is (in, out), b2d is (1, out) -- both hoisted
    out of the per-call path by the caller."""
    batch = x.shape[0]
    if batch <= tile_b:
        return _forward_whole(x, w_t, b2d)
    return _forward_tiled(x, w_t, b2d, tile_b)


if __name__ == "__main__":
    key = jax.random.PRNGKey(0)
    k_x, k_w, k_b, k_x2 = jax.random.split(key, 4)

    batch, in_features, out_features = 8, 10, 2

    # Deterministic parameter init (mimics torch.nn.Linear's uniform bound).
    bound = 1.0 / (in_features ** 0.5)
    w = jax.random.uniform(k_w, (out_features, in_features),
                           minval=-bound, maxval=bound, dtype=jnp.float32)
    b = jax.random.uniform(k_b, (out_features,),
                           minval=-bound, maxval=bound, dtype=jnp.float32)

    # Hoisted once: pre-transposed weight and 2-D bias.
    w_t = jnp.asarray(w.T)                       # (10, 2)
    b2d = b.reshape(1, out_features)             # (1, 2)

    # --- small-batch (grid-free) path, matching the module's tiny shapes ---
    x = jax.random.normal(k_x, (batch, in_features), dtype=jnp.float32)
    y = dummy_model_forward(x, w_t, b2d)
    jax.block_until_ready(y)
    y_ref = x @ w.T + b
    assert y.shape == (batch, out_features)
    assert jnp.allclose(y, y_ref, atol=1e-5, rtol=1e-5)

    # --- batch-tiled path (small tile so the test stays tiny) ---
    big_batch, tile_b = 64, 16
    x_big = jax.random.normal(k_x2, (big_batch, in_features), dtype=jnp.float32)
    y_big = dummy_model_forward(x_big, w_t, b2d, tile_b=tile_b)
    jax.block_until_ready(y_big)
    y_big_ref = x_big @ w.T + b
    assert y_big.shape == (big_batch, out_features)
    assert jnp.allclose(y_big, y_big_ref, atol=1e-5, rtol=1e-5)

    print("KERNEL_OK")
</pallas_src>

<mosaic_0001>
module attributes {stable_mosaic.version = 11 : i64} {
  func.func @_linear_kernel(%arg0: memref<8x10xf32, #tpu.memory_space<vmem>>, %arg1: memref<10x2xf32, #tpu.memory_space<vmem>>, %arg2: memref<1x2xf32, #tpu.memory_space<vmem>>, %arg3: memref<8x2xf32, #tpu.memory_space<vmem>>) attributes {dimension_semantics = [], scalar_prefetch = 0 : i64, scratch_operands = 0 : i64, tpu.core_type = #tpu.core_type<tc>} {
    %c0 = arith.constant 0 : index
    %c0_0 = arith.constant 0 : index
    %0 = vector.load %arg0[%c0, %c0_0] : memref<8x10xf32, #tpu.memory_space<vmem>>, vector<8x10xf32>
    %c0_1 = arith.constant 0 : index
    %c0_2 = arith.constant 0 : index
    %1 = vector.load %arg1[%c0_1, %c0_2] : memref<10x2xf32, #tpu.memory_space<vmem>>, vector<10x2xf32>
    %cst = arith.constant dense<0.000000e+00> : vector<8x2xf32>
    %2 = tpu.matmul %0, %1, %cst {dimension_numbers = #tpu.dot_dimension_numbers<[1], [0], [0], [1], [0, 0, 1, 1], [], []>} : vector<8x10xf32>, vector<10x2xf32>, vector<8x2xf32> -> vector<8x2xf32>
    %c0_3 = arith.constant 0 : index
    %c0_4 = arith.constant 0 : index
    %3 = vector.load %arg2[%c0_3, %c0_4] : memref<1x2xf32, #tpu.memory_space<vmem>>, vector<1x2xf32>
    %4 = vector.broadcast %3 : vector<1x2xf32> to vector<8x2xf32>
    %5 = arith.addf %2, %4 : vector<8x2xf32>
    %c0_5 = arith.constant 0 : index
    %c0_6 = arith.constant 0 : index
    %6 = vector.load %arg3[%c0_5, %c0_6] : memref<8x2xf32, #tpu.memory_space<vmem>>, vector<8x2xf32>
    tpu.vector_store %arg3[%c0_5, %c0_6], %5 {strides = array<i32>} : memref<8x2xf32, #tpu.memory_space<vmem>>, vector<8x2xf32>,
    return
  }
}

</mosaic_0001>

<bundles_post_ra>
// kernel: tpu_custom_call.1
= control target key start
LH: loop header
LB: loop body
LE: loop exit
PB: predicated region body
PF: predicated region fallthrough
CT: control target
= control target key end

     0   :  { %vm28_vm0 = vcmask 1041408   ;;  %v123_v0 = vmov 0.0   ;;  %vm124_vm1 = vmmov 0   ;;  %vm24_vm2 = vcmask 80896   ;;  %s160_s1 = inlined_call_operand.vmem [shape: f32[10,2], index: 1, kind: input, shape index: {}]   ;;  %s161_s0 = inlined_call_operand.vmem [shape: f32[8,10], index: 0, kind: input, shape index: {}]   ;;  %s162_s2 = inlined_call_operand.vmem [shape: f32[1,2], index: 2, kind: input, shape index: {}]   ;;  %s163_s3 = inlined_call_operand.vmem [shape: f32[8,2], index: 3, kind: output, shape index: {}]  }
   0x1   :  { %114 = vmatprep.subr.mxu0 %v123_v0  ;;  %v16_v1 = vld [vmem:[%s160_s1 + $0x8] sm:$0x3]  ;;  %v15_v2 = vld [vmem:[%s160_s1] sm:$0xff]  ;;  %118 = vmatprep.mubr.msk.f32.mxu0 %vm124_vm1, %v123_v0  ;;  %vm102_vm3 = vcmask 15360  }
   0x2   :  { %115 = vmatpush3.msk.msra.mxu0 %vm28_vm0, %v16_v1  ;;  %v14_v3 = vld [vmem:[%s161_s0] sm:$0xff] }
   0x3   :  { %116 = vmatprep.subr.mxu0 %v123_v0  ;;  %v108_v4 = vld [vmem:[%s162_s2] ss:$0 sm:$0xff] }
   0x4   :  { %117 = vmatpush3.msra.mxu0 %v15_v2 }
   0x5   :  { %119 = vmatmul.mubr.msk.f32.vlgmr.msra.gmra.mxu0 %vm24_vm2, %v14_v3 }
  0xc5   :  { %v98_v5 = vpop.f32.mrf.mxu0 }
  0xc6   :  { %v99_v6 = vadd.f32 %v108_v4, %v98_v5 }
  0xc7   :  { %v120_v7 = vpop.f32.mrf.mxu0 }
  0xc8   :  { %103 = vst.msk [vmem:[%s163_s3] sm:$0xff] %vm102_vm3, %v99_v6 }

</bundles_post_ra>
